<compile_context>
chip_gen: v5e
topology: v5e:2x2
jax: 0.10.0
libtpu: 0.0.40
codegen_flags: <defaults>
</compile_context>

<pallas_src>
import functools

import jax
import jax.numpy as jnp
from jax.experimental import pallas as pl
from jax.experimental.pallas import tpu as pltpu


IN_F, H1, H2, OUT_F = 13, 6, 4, 1
TM_MAX = 8192  # row-major (TM, 13) f32 tile lane-pads to 128 -> 4 MiB/buffer


def mlp_kernel(p_ref, x_ref, o_ref):
    # p_ref: (48, 128) packed parameter slab (resident in VMEM across the grid).
    # x_ref: (TM, 13) native row-major x tile.   o_ref: (1, TM) lane-dense output.
    x = x_ref[...]                       # (TM, 13) f32

    # Static, tile-aligned slices of the packed parameter slab (sublane offsets
    # are multiples of 8).
    w1 = p_ref[0:6, 0:13]                # (6, 13)
    b1 = p_ref[8:14, 0:1]                # (6, 1)
    w2 = p_ref[16:20, 0:6]               # (4, 6)
    b2 = p_ref[24:28, 0:1]               # (4, 1)
    w3 = p_ref[32:33, 0:4]               # (1, 4)
    b3 = p_ref[40:41, 0:1]               # (1, 1)

    def sigmoid(v):
        # sigmoid(v) == 0.5 * tanh(0.5 * v) + 0.5 : single EUP op + cheap VPU ops,
        # avoids an exp + divide lowering of lax.logistic.
        return 0.5 * jnp.tanh(0.5 * v) + 0.5

    # Layer 1: contract the feature axis of both operands so the result is
    # produced directly in the transposed (6, TM) layout (batch on lanes).
    z1 = jax.lax.dot_general(
        w1, x, (((1,), (1,)), ((), ())), preferred_element_type=jnp.float32
    )                                                                       # (6, TM)
    h1 = sigmoid(z1 + b1)                                                   # (6, TM)
    h2 = sigmoid(jnp.dot(w2, h1, preferred_element_type=jnp.float32) + b2)  # (4, TM)
    h3 = sigmoid(jnp.dot(w3, h2, preferred_element_type=jnp.float32) + b3)  # (1, TM)
    o_ref[...] = h3.astype(o_ref.dtype)                                     # lane-dense store


def pack_params(params):
    """Pack (W1,b1,W2,b2,W3,b3) in PyTorch (out,in)/(out,) layout into one (48,128) slab.

    Called ONCE (outside the per-call path); the slab stays on device.
    """
    w1, b1, w2, b2, w3, b3 = params
    slab = jnp.zeros((48, 128), jnp.float32)
    slab = slab.at[0:6, 0:13].set(w1.astype(jnp.float32))
    slab = slab.at[8:14, 0:1].set(b1.reshape(H1, 1).astype(jnp.float32))
    slab = slab.at[16:20, 0:6].set(w2.astype(jnp.float32))
    slab = slab.at[24:28, 0:1].set(b2.reshape(H2, 1).astype(jnp.float32))
    slab = slab.at[32:33, 0:4].set(w3.astype(jnp.float32))
    slab = slab.at[40:41, 0:1].set(b3.reshape(OUT_F, 1).astype(jnp.float32))
    return slab


@functools.partial(jax.jit, static_argnames=("tm",))
def _forward_impl(slab, x, tm):
    x = x.astype(jnp.float32)            # no-op for f32 inputs
    n = x.shape[0]
    num_blocks = pl.cdiv(n, tm)          # last x block may be partial: padding
    out_cols = num_blocks * tm           # rows produce garbage lanes we slice away

    out_t = pl.pallas_call(
        mlp_kernel,
        out_shape=jax.ShapeDtypeStruct((1, out_cols), jnp.float32),
        grid=(num_blocks,),
        in_specs=[
            pl.BlockSpec((48, 128), lambda i: (0, 0)),      # params: resident, never re-DMA'd
            pl.BlockSpec((tm, IN_F), lambda i: (i, 0)),     # native row-major x tiles, pipelined
        ],
        out_specs=pl.BlockSpec((1, tm), lambda i: (0, i)),  # lane-dense output tiles
        compiler_params=pltpu.CompilerParams(
            dimension_semantics=("parallel",)),             # v7x: shard batch grid across 2 TCs
    )(slab, x)

    return out_t[0, :n].reshape(n, 1)


def mlp_forward(x, slab, *, tm_max=TM_MAX):
    """x: (n, 13) f32, slab: packed params -> (n, 1) f32, same semantics as Model.forward."""
    n = x.shape[0]
    # Single full block when the batch fits (no padding, block == array dims);
    # otherwise a multiple-of-(8,128) tile with a possibly-partial last block.
    tm = n if n <= tm_max else tm_max
    return _forward_impl(slab, x, tm)


def init_params(key):
    # Deterministic init mimicking PyTorch nn.Linear default: U(-1/sqrt(fan_in), +1/sqrt(fan_in)),
    # weights stored as (out, in), biases as (out,).
    def linear(key, fan_in, fan_out):
        kw, kb = jax.random.split(key)
        bound = 1.0 / jnp.sqrt(jnp.float32(fan_in))
        w = jax.random.uniform(kw, (fan_out, fan_in), jnp.float32, -bound, bound)
        b = jax.random.uniform(kb, (fan_out,), jnp.float32, -bound, bound)
        return w, b

    k1, k2, k3 = jax.random.split(key, 3)
    w1, b1 = linear(k1, IN_F, H1)
    w2, b2 = linear(k2, H1, H2)
    w3, b3 = linear(k3, H2, OUT_F)
    return (w1, b1, w2, b2, w3, b3)


if __name__ == "__main__":
    key = jax.random.PRNGKey(0)
    k_params, k_x = jax.random.split(key)
    params = init_params(k_params)
    w1, b1, w2, b2, w3, b3 = params
    slab = pack_params(params)            # built once, stays on device

    def reference(x):
        h = jax.nn.sigmoid(x @ w1.T + b1)
        h = jax.nn.sigmoid(h @ w2.T + b2)
        return jax.nn.sigmoid(h @ w3.T + b3)

    # Small-shape check (single full block, batch == tile).
    batch = 8
    x_small = jax.random.normal(k_x, (batch, IN_F), dtype=jnp.float32)
    out_small = jax.block_until_ready(mlp_forward(x_small, slab))
    assert out_small.shape == (batch, 1)
    assert jnp.allclose(out_small, reference(x_small), atol=1e-5), "small-batch mismatch"

    # Larger batch, still a single block (5000 <= TM_MAX).
    big = 5000
    x_big = jax.random.normal(jax.random.PRNGKey(1), (big, IN_F), dtype=jnp.float32)
    out_big = jax.block_until_ready(mlp_forward(x_big, slab))
    assert out_big.shape == (big, 1)
    assert jnp.allclose(out_big, reference(x_big), atol=1e-5), "large-batch mismatch"

    # Forced multi-block grid with a partial last block (exercises pipelining +
    # boundary padding path without any wrapper-side copy of x).
    out_tiled = jax.block_until_ready(mlp_forward(x_big, slab, tm_max=1024))
    assert out_tiled.shape == (big, 1)
    assert jnp.allclose(out_tiled, reference(x_big), atol=1e-5), "tiled-batch mismatch"

    print("KERNEL_OK")
</pallas_src>

<mosaic_0001>
module attributes {stable_mosaic.version = 11 : i64} {
  func.func @mlp_kernel(%arg0: i32, %arg1: memref<48x128xf32, #tpu.memory_space<vmem>>, %arg2: memref<8x13xf32, #tpu.memory_space<vmem>>, %arg3: memref<1x8xf32, #tpu.memory_space<vmem>>) attributes {dimension_semantics = [#tpu.dimension_semantics<parallel>], iteration_bounds = array<i64: 1>, scalar_prefetch = 0 : i64, scratch_operands = 0 : i64, tpu.core_type = #tpu.core_type<tc>, window_params = [{pipeline_mode = #tpu.pipeline_mode<synchronous>, transform_indices = @transform_0, window_bounds = array<i64: 48, 128>}, {transform_indices = @transform_1, window_bounds = array<i64: 8, 13>}, {transform_indices = @transform_2, window_bounds = array<i64: 1, 8>}]} {
    %c0 = arith.constant 0 : index
    %c0_0 = arith.constant 0 : index
    %0 = vector.load %arg2[%c0, %c0_0] : memref<8x13xf32, #tpu.memory_space<vmem>>, vector<8x13xf32>
    %c0_1 = arith.constant 0 : index
    %c0_2 = arith.constant 0 : index
    %1 = vector.load %arg1[%c0_1, %c0_2] : memref<48x128xf32, #tpu.memory_space<vmem>>, vector<6x13xf32>
    %c8 = arith.constant 8 : index
    %c0_3 = arith.constant 0 : index
    %2 = vector.load %arg1[%c8, %c0_3] : memref<48x128xf32, #tpu.memory_space<vmem>>, vector<6x1xf32>
    %c16 = arith.constant 16 : index
    %c0_4 = arith.constant 0 : index
    %3 = vector.load %arg1[%c16, %c0_4] : memref<48x128xf32, #tpu.memory_space<vmem>>, vector<4x6xf32>
    %c24 = arith.constant 24 : index
    %c0_5 = arith.constant 0 : index
    %4 = vector.load %arg1[%c24, %c0_5] : memref<48x128xf32, #tpu.memory_space<vmem>>, vector<4x1xf32>
    %c32 = arith.constant 32 : index
    %c0_6 = arith.constant 0 : index
    %5 = vector.load %arg1[%c32, %c0_6] : memref<48x128xf32, #tpu.memory_space<vmem>>, vector<1x4xf32>
    %c40 = arith.constant 40 : index
    %c0_7 = arith.constant 0 : index
    %6 = vector.load %arg1[%c40, %c0_7] : memref<48x128xf32, #tpu.memory_space<vmem>>, vector<1x1xf32>
    %cst = arith.constant dense<0.000000e+00> : vector<6x8xf32>
    %7 = tpu.matmul %1, %0, %cst {dimension_numbers = #tpu.dot_dimension_numbers<[1], [1], [0], [0], [0, 0, 1, 0], [], []>} : vector<6x13xf32>, vector<8x13xf32>, vector<6x8xf32> -> vector<6x8xf32>
    %8 = vector.broadcast %2 : vector<6x1xf32> to vector<6x8xf32>
    %9 = arith.addf %7, %8 : vector<6x8xf32>
    %cst_8 = arith.constant 5.000000e-01 : f32
    %10 = vector.broadcast %cst_8 : f32 to vector<6x8xf32>
    %11 = arith.mulf %10, %9 : vector<6x8xf32>
    %12 = math.tanh %11 : vector<6x8xf32>
    %cst_9 = arith.constant 5.000000e-01 : f32
    %13 = vector.broadcast %cst_9 : f32 to vector<6x8xf32>
    %14 = arith.mulf %13, %12 : vector<6x8xf32>
    %cst_10 = arith.constant 5.000000e-01 : f32
    %15 = vector.broadcast %cst_10 : f32 to vector<6x8xf32>
    %16 = arith.addf %14, %15 : vector<6x8xf32>
    %cst_11 = arith.constant dense<0.000000e+00> : vector<4x8xf32>
    %17 = tpu.matmul %3, %16, %cst_11 {dimension_numbers = #tpu.dot_dimension_numbers<[1], [0], [0], [1], [0, 0, 1, 1], [], []>} : vector<4x6xf32>, vector<6x8xf32>, vector<4x8xf32> -> vector<4x8xf32>
    %18 = vector.broadcast %4 : vector<4x1xf32> to vector<4x8xf32>
    %19 = arith.addf %17, %18 : vector<4x8xf32>
    %cst_12 = arith.constant 5.000000e-01 : f32
    %20 = vector.broadcast %cst_12 : f32 to vector<4x8xf32>
    %21 = arith.mulf %20, %19 : vector<4x8xf32>
    %22 = math.tanh %21 : vector<4x8xf32>
    %cst_13 = arith.constant 5.000000e-01 : f32
    %23 = vector.broadcast %cst_13 : f32 to vector<4x8xf32>
    %24 = arith.mulf %23, %22 : vector<4x8xf32>
    %cst_14 = arith.constant 5.000000e-01 : f32
    %25 = vector.broadcast %cst_14 : f32 to vector<4x8xf32>
    %26 = arith.addf %24, %25 : vector<4x8xf32>
    %cst_15 = arith.constant dense<0.000000e+00> : vector<1x8xf32>
    %27 = tpu.matmul %5, %26, %cst_15 {dimension_numbers = #tpu.dot_dimension_numbers<[1], [0], [0], [1], [0, 0, 1, 1], [], []>} : vector<1x4xf32>, vector<4x8xf32>, vector<1x8xf32> -> vector<1x8xf32>
    %28 = vector.broadcast %6 : vector<1x1xf32> to vector<1x8xf32>
    %29 = arith.addf %27, %28 : vector<1x8xf32>
    %cst_16 = arith.constant 5.000000e-01 : f32
    %30 = vector.broadcast %cst_16 : f32 to vector<1x8xf32>
    %31 = arith.mulf %30, %29 : vector<1x8xf32>
    %32 = math.tanh %31 : vector<1x8xf32>
    %cst_17 = arith.constant 5.000000e-01 : f32
    %33 = vector.broadcast %cst_17 : f32 to vector<1x8xf32>
    %34 = arith.mulf %33, %32 : vector<1x8xf32>
    %cst_18 = arith.constant 5.000000e-01 : f32
    %35 = vector.broadcast %cst_18 : f32 to vector<1x8xf32>
    %36 = arith.addf %34, %35 : vector<1x8xf32>
    %c0_19 = arith.constant 0 : index
    %c0_20 = arith.constant 0 : index
    %37 = vector.load %arg3[%c0_19, %c0_20] : memref<1x8xf32, #tpu.memory_space<vmem>>, vector<1x8xf32>
    tpu.vector_store %arg3[%c0_19, %c0_20], %36 {strides = array<i32>} : memref<1x8xf32, #tpu.memory_space<vmem>>, vector<1x8xf32>,
    return
  }
  func.func @transform_0(%arg0: i32) -> (i32, i32) {
    %c0_i32 = arith.constant 0 : i32
    %c0_i32_0 = arith.constant 0 : i32
    %c0_i32_1 = arith.constant 0 : i32
    return %c0_i32, %c0_i32_0 : i32, i32
  }
  func.func @transform_1(%arg0: i32) -> (i32, i32) {
    %c0_i32 = arith.constant 0 : i32
    %c0_i32_0 = arith.constant 0 : i32
    return %arg0, %c0_i32 : i32, i32
  }
  func.func @transform_2(%arg0: i32) -> (i32, i32) {
    %c0_i32 = arith.constant 0 : i32
    %c0_i32_0 = arith.constant 0 : i32
    return %c0_i32, %arg0 : i32, i32
  }
}

</mosaic_0001>

<bundles_post_ra>
// kernel: _forward_impl.1
= control target key start
LH: loop header
LB: loop body
LE: loop exit
PB: predicated region body
PF: predicated region fallthrough
CT: control target
= control target key end

     0   :  { %7 = vsyncpa [#allocation3], 0  ;;  %s307_s0 = inlined_call_operand.hbm [shape: f32[48,128], index: 0, kind: input, shape index: {}]   ;;  %s308_s1 = inlined_call_operand.hbm [shape: f32[8,13], index: 1, kind: input, shape index: {}]   ;;  %s309_s2 = inlined_call_operand.hbm [shape: f32[1,8], index: 2, kind: output, shape index: {}]  }
   0x1   :  { %8 = vsyncpa [#allocation6], 0 }
   0x2   :  { %9 = vsyncpa [#allocation4], 0  ;;  %s14_s11 = sshll.u32 %s307_s0, 4  ;;  %s277_s12 = smov [#allocation2]   ;;  %s15_s11 = int_to_ptr.hbm [resolvable:$true] %s14_s11 }
   0x3   :  { %s16_s13 = sshll.u32 %s277_s12, 4  ;;  %s28_s16 = sshll.u32 %s308_s1, 4  ;;  %s17_s13 = int_to_ptr.vmem [resolvable:$true] %s16_s13  ;;  %s29_s16 = int_to_ptr.hbm [resolvable:$true] %s28_s16 }
   0x4   :  { %s278_s17 = smov 128   ;;  %s279_s18 = smov 8  }
   0x5   :  { %22 = dma.hbm_to_vmem [thread:$0]  %s15_s11, 768, %s17_s13, [#allocation3], %s278_s17, %s278_s17, %s279_s18  }
   0x6   :  { %s280_s19 = smov [#allocation5]  }
   0x7   :  { %s30_s20 = sshll.u32 %s280_s19, 4  ;;  %s31_s20 = int_to_ptr.vmem [resolvable:$true] %s30_s20 }
   0x8   :  { %33 = dma.hbm_to_vmem [thread:$0]  %s29_s16, 128, %s31_s20, [#allocation6]  }
   0x9   :  { %271 = dma.done.wait [#allocation3], 768  }
   0xa   :  { %272 = vsyncadd [#allocation3], 4294966528 }
   0xb   :  { %273 = dma.done.wait [#allocation6], 128  }
   0xc   :  { %274 = vsyncadd [#allocation6], 4294967168  ;;  %v281_v0 = vmov 0   ;;  %vm54_vm0 = vcmask 105472   ;;  %v42_v1 = vld [vmem:[#allocation5] sm:$0xff]  ;;  %vm94_vm1 = vcmask 1045504  }
   0xd   :  { %191 = vset.pattern.permute.xlu0 %v281_v0  ;;  %192 = vset.pattern.permute.xlu1 %v281_v0  ;;  %v44_v2 = vld [vmem:[#allocation2 + $0x8] sm:$0x3f]  ;;  %v43_v3 = vld [vmem:[#allocation2] sm:$0x3f]  ;;  %v46_v4 = vld [vmem:[#allocation2 + $0x18] sm:$0xf] }
   0xe   :  { %179 = vmatpush.xpose.msk.msra.mxu0 %vm54_vm0, %v42_v1  ;;  %51 = vperm.xlu0 %191, %v44_v2   ;;  %v45_v12 = vld [vmem:[#allocation2 + $0x10] sm:$0xf]  ;;  %vm90_vm2 = vcmask 48128   ;;  %v48_v13 = vld [vmem:[#allocation2 + $0x28] sm:$0x1]  ;;  %vm131_vm3 = vcmask 1043456  }
   0xf   :  { %124 = vperm.xlu1 %192, %v48_v13   ;;  %v47_v21 = vld [vmem:[#allocation2 + $0x20] sm:$0x1]  ;;  %vm127_vm4 = vcmask 31744   ;;  %s282_s0 = smov [#allocation7]   ;;  %s168_s23 = sshll.u32 %s309_s2, 4  ;;  %vm159_vm5 = vcmask 57344   ;;  %s169_s23 = int_to_ptr.hbm [resolvable:$true] %s168_s23 }
  0x10   :  { %s166_s1 = sshll.u32 %s282_s0, 4  ;;  %s167_s1 = int_to_ptr.vmem [resolvable:$true] %s166_s1 }
  0x11   :  { %180 = vmatmul.msk.f32.vlgmr.msra.gmra.mxu0 %vm54_vm0, %v43_v3 }
  0x16   :  { %87 = vperm.xlu0 %191, %v46_v4  }
  0x80   :  { %v52_v5 = vpop.permute.xlu0 %51 }
  0x81   :  { %v125_v22 = vpop.permute.xlu1 %124 }
  0x88   :  { %v88_v14 = vpop.permute.xlu0 %87 }
  0x8e   :  { %v78_v6 = vpop.f32.mrf.mxu0 }
  0x8f   :  { %v79_v7 = vadd.f32 %v78_v6, %v52_v5 }
  0x91   :  { %v81_v8 = vmul.f32 0.5, %v79_v7 }
  0x93   :  { %193 = vtanh.f32 %v81_v8 }
  0x99   :  { %v194_v9 = vpop.eup %193 }
  0x9a   :  { %v83_v10 = vmul.f32 0.5, %v194_v9 }
  0x9c   :  { %v84_v11 = vadd.f32 0.5, %v83_v10 }
  0x9e   :  { %181 = vmatpush.msk.msra.mxu1 %vm94_vm1, %v84_v11 }
  0x9f   :  { %182 = vmatmul.msk.f32.vlgmr.msra.gmra.mxu1 %vm90_vm2, %v45_v12 }
 0x11c   :  { %v115_v15 = vpop.f32.mrf.mxu1 }
 0x11d   :  { %v116_v16 = vadd.f32 %v115_v15, %v88_v14 }
 0x11f   :  { %v118_v17 = vmul.f32 0.5, %v116_v16 }
 0x121   :  { %195 = vtanh.f32 %v118_v17 }
 0x127   :  { %v196_v18 = vpop.eup %195 }
 0x128   :  { %v120_v19 = vmul.f32 0.5, %v196_v18 }
 0x12a   :  { %v121_v20 = vadd.f32 0.5, %v120_v19 }
 0x12c   :  { %183 = vmatpush.msk.msra.mxu2 %vm131_vm3, %v121_v20 }
 0x12d   :  { %184 = vmatmul.msk.f32.vlgmr.msra.gmra.mxu2 %vm127_vm4, %v47_v21 }
 0x1b0   :  { %v152_v23 = vpop.f32.mrf.mxu2 }
 0x1b1   :  { %v153_v24 = vadd.f32 %v152_v23, %v125_v22 }
 0x1b3   :  { %v155_v25 = vmul.f32 0.5, %v153_v24 }
 0x1b5   :  { %197 = vtanh.f32 %v155_v25 }
 0x1bb   :  { %v198_v26 = vpop.eup %197 }
 0x1bc   :  { %v157_v27 = vmul.f32 0.5, %v198_v26 }
 0x1be   :  { %v158_v28 = vadd.f32 0.5, %v157_v27 }
 0x1c0   :  { %160 = vst.msk [vmem:[#allocation7] sm:$0x1] %vm159_vm5, %v158_v28 }
 0x1c1   :  { %171 = dma.vmem_to_hbm [thread:$0]  %s167_s1, 16, %s169_s23, [#allocation4]  }
 0x1c2   :  { %275 = dma.done.wait [#allocation4], 16  }
 0x1c3   :  { %276 = vsyncadd [#allocation4], 4294967280 }
 0x1c4   :  { %176 = vsyncpa [#allocation3], 1 }
 0x1c5   :  { %177 = vsyncpa [#allocation6], 1 }
 0x1c6   :  { %178 = vsyncpa [#allocation4], 1 }

</bundles_post_ra>
